<compile_context>
chip_gen: v7x
topology: tpu7x:2x2x1
jax: 0.10.0
libtpu: 0.0.40
codegen_flags: <defaults>
</compile_context>

<pallas_src>
import functools

import jax
import jax.numpy as jnp
from jax.experimental import pallas as pl
from jax.experimental.pallas import tpu as pltpu

_LANES = 128


def _lstm_seq_kernel(x_ref, w_ref, b_ref, wd_ref, bd_ref, out_ref,
                     h_ref, c_ref, *, hidden_size):
    """One LSTM time step per grid iteration; h/c carried in VMEM scratch."""
    H = hidden_size
    t = pl.program_id(0)

    @pl.when(t == 0)
    def _():
        h_ref[...] = jnp.zeros_like(h_ref)
        c_ref[...] = jnp.zeros_like(c_ref)

    x = x_ref[0]                                              # (B, I), f32

    # Fused gate matmul: [x_t, h_{t-1}] @ [W_ih ; W_hh]^T  (single MXU push).
    xh = jnp.concatenate([x, h_ref[...]], axis=1)             # (B, I+H)
    gates = (jnp.dot(xh.astype(w_ref.dtype), w_ref[...],
                     preferred_element_type=jnp.float32)
             + b_ref[...])                                    # (B, 4H), f32

    # Two full-vreg EUP passes (one sigmoid, one tanh), then per-gate slices.
    # PyTorch gate order along 4H: [i, f, g, o].
    sig = jax.nn.sigmoid(gates)
    tnh = jnp.tanh(gates)
    i_g = sig[:, 0 * H:1 * H]
    f_g = sig[:, 1 * H:2 * H]
    g_g = tnh[:, 2 * H:3 * H]
    o_g = sig[:, 3 * H:4 * H]

    c_new = f_g * c_ref[...] + i_g * g_g                      # (B, H)
    h_new = o_g * jnp.tanh(c_new)                             # (B, H)
    c_ref[...] = c_new
    h_ref[...] = h_new

    # Dense + LogSoftmax.  Output lanes are padded to a multiple of 128; the
    # pad bias is -1e30, so padded columns never win the max and contribute
    # exp(-huge) == 0 to the sum.
    y = (jnp.dot(h_new.astype(wd_ref.dtype), wd_ref[...],
                 preferred_element_type=jnp.float32)
         + bd_ref[...])                                       # (B, O_pad)
    m = jnp.max(y, axis=1, keepdims=True)
    z = y - m
    lse = jnp.log(jnp.sum(jnp.exp(z), axis=1, keepdims=True))
    out_ref[0] = (z - lse).astype(out_ref.dtype)


def prepare_params(w_ih, b_ih, w_hh, b_hh, w_dense, b_dense, *,
                   param_dtype=jnp.float32):
    """One-time layout prep (stack / transpose / pad / cast). NOT per-call.

    Returns:
      w_fused_t : (I+H, 4H)  = [W_ih ; W_hh]^T           (param_dtype)
      bias      : (1, 4H)    = b_ih + b_hh               (f32)
      wd_t_pad  : (H, O_pad) = W_dense^T, zero-padded    (param_dtype)
      bd_pad    : (1, O_pad) = b_dense, pad = -1e30      (f32)

    param_dtype=jnp.bfloat16 halves MXU/DMA bytes on v6e/v7x (accumulation and
    nonlinearities remain f32); keep f32 for bit-accurate tests and on v5e.
    """
    H4, _ = w_ih.shape
    O = w_dense.shape[0]
    O_pad = pl.cdiv(O, _LANES) * _LANES

    w_fused = jnp.concatenate([jnp.asarray(w_ih, jnp.float32),
                               jnp.asarray(w_hh, jnp.float32)], axis=1)
    w_fused_t = w_fused.T.astype(param_dtype)                 # (I+H, 4H)
    bias = (jnp.asarray(b_ih, jnp.float32)
            + jnp.asarray(b_hh, jnp.float32)).reshape(1, H4)  # (1, 4H)

    wd_t_pad = jnp.zeros((w_dense.shape[1], O_pad), param_dtype)
    wd_t_pad = wd_t_pad.at[:, :O].set(
        jnp.asarray(w_dense, jnp.float32).T.astype(param_dtype))
    bd_pad = jnp.full((1, O_pad), -1e30, jnp.float32)
    bd_pad = bd_pad.at[0, :O].set(jnp.asarray(b_dense, jnp.float32))
    return w_fused_t, bias, wd_t_pad, bd_pad


@functools.partial(jax.jit, static_argnames=("output_size",))
def lstm_forward(xs, w_fused_t, bias, wd_t_pad, bd_pad, *, output_size):
    """Run the LSTM over xs: (T, B, I) -> (T, B, output_size) log-probs.

    The time loop is a Pallas grid axis ("arbitrary"): weights stay resident in
    VMEM via constant-index BlockSpecs; h/c live in VMEM scratch across steps.
    """
    T, B, I = xs.shape
    H4 = bias.shape[1]
    H = H4 // 4
    O_pad = wd_t_pad.shape[1]

    kernel = functools.partial(_lstm_seq_kernel, hidden_size=H)

    out_pad = pl.pallas_call(
        kernel,
        out_shape=jax.ShapeDtypeStruct((T, B, O_pad), jnp.float32),
        grid_spec=pltpu.PrefetchScalarGridSpec(
            num_scalar_prefetch=0,
            grid=(T,),                                        # time (recurrent)
            in_specs=[
                pl.BlockSpec((1, B, I), lambda t: (t, 0, 0)),     # x_t (streamed)
                pl.BlockSpec((I + H, H4), lambda t: (0, 0)),      # [W_ih;W_hh]^T, resident
                pl.BlockSpec((1, H4), lambda t: (0, 0)),          # b_ih+b_hh, resident
                pl.BlockSpec((H, O_pad), lambda t: (0, 0)),       # W_d^T (padded), resident
                pl.BlockSpec((1, O_pad), lambda t: (0, 0)),       # b_d (padded), resident
            ],
            out_specs=pl.BlockSpec((1, B, O_pad), lambda t: (t, 0, 0)),
            scratch_shapes=[
                pltpu.VMEM((B, H), jnp.float32),              # h carry
                pltpu.VMEM((B, H), jnp.float32),              # c carry
            ],
        ),
        compiler_params=pltpu.CompilerParams(
            dimension_semantics=("arbitrary",)),              # true recurrence
    )(xs.astype(jnp.float32), w_fused_t, bias, wd_t_pad, bd_pad)

    return out_pad[:, :, :output_size]


def lstm_module_forward(x, params, *, output_size):
    """Exact equivalent of the PyTorch module forward: x -> (1, O) log-probs."""
    w_fused_t, bias, wd_t_pad, bd_pad = params
    xs = jnp.asarray(x, jnp.float32).reshape(1, 1, -1)        # input.view(1, 1, -1)
    out = lstm_forward(xs, w_fused_t, bias, wd_t_pad, bd_pad,
                       output_size=output_size)               # (1, 1, O)
    return out.reshape(-1, output_size)                       # (1, O)


# ----------------------------- pure-JAX references -----------------------------

def _ref_single_step(x_flat, w_ih, b_ih, w_hh, b_hh, w_d, b_d):
    H = w_ih.shape[0] // 4
    x = x_flat.reshape(1, -1).astype(jnp.float32)
    gates = x @ w_ih.T + b_ih + b_hh                          # h0 = 0
    i = jax.nn.sigmoid(gates[:, 0 * H:1 * H])
    f = jax.nn.sigmoid(gates[:, 1 * H:2 * H])
    g = jnp.tanh(gates[:, 2 * H:3 * H])
    o = jax.nn.sigmoid(gates[:, 3 * H:4 * H])
    c = f * 0.0 + i * g                                       # c0 = 0
    h = o * jnp.tanh(c)
    y = h @ w_d.T + b_d
    return jax.nn.log_softmax(y, axis=1)


def _ref_seq(xs, w_ih, b_ih, w_hh, b_hh, w_d, b_d):
    H = w_ih.shape[0] // 4
    B = xs.shape[1]

    def step(carry, x_t):
        h, c = carry
        gates = x_t @ w_ih.T + h @ w_hh.T + b_ih + b_hh
        i = jax.nn.sigmoid(gates[:, 0 * H:1 * H])
        f = jax.nn.sigmoid(gates[:, 1 * H:2 * H])
        g = jnp.tanh(gates[:, 2 * H:3 * H])
        o = jax.nn.sigmoid(gates[:, 3 * H:4 * H])
        c = f * c + i * g
        h = o * jnp.tanh(c)
        return (h, c), h

    init = (jnp.zeros((B, H), jnp.float32), jnp.zeros((B, H), jnp.float32))
    _, hs = jax.lax.scan(step, init, xs)
    ys = jnp.einsum("tbh,oh->tbo", hs, w_d) + b_d
    return jax.nn.log_softmax(ys, axis=-1)


if __name__ == "__main__":
    INPUT_SIZE, HIDDEN_SIZE, OUTPUT_SIZE = 32, 32, 16

    key = jax.random.PRNGKey(0)
    kx, ks, k1, k2, k3, k4, k5, k6 = jax.random.split(key, 8)

    # PyTorch-style uniform(-1/sqrt(H), 1/sqrt(H)) init, deterministic.
    bound = 1.0 / (HIDDEN_SIZE ** 0.5)
    u = lambda k, shape: jax.random.uniform(k, shape, jnp.float32, -bound, bound)

    w_ih = u(k1, (4 * HIDDEN_SIZE, INPUT_SIZE))
    w_hh = u(k2, (4 * HIDDEN_SIZE, HIDDEN_SIZE))
    b_ih = u(k3, (4 * HIDDEN_SIZE,))
    b_hh = u(k4, (4 * HIDDEN_SIZE,))
    w_dense = u(k5, (OUTPUT_SIZE, HIDDEN_SIZE))
    b_dense = u(k6, (OUTPUT_SIZE,))

    # One-time parameter prep (stack / transpose / pad hoisted out of the call).
    params = prepare_params(w_ih, b_ih, w_hh, b_hh, w_dense, b_dense)
    params = jax.block_until_ready(params)

    # 1) Module-equivalent forward (seq=1, batch=1) — exactly the PyTorch spec.
    x = jax.random.normal(kx, (INPUT_SIZE,), jnp.float32)     # flattened by view(1,1,-1)
    out = jax.block_until_ready(
        lstm_module_forward(x, params, output_size=OUTPUT_SIZE))
    ref = _ref_single_step(x, w_ih, b_ih, w_hh, b_hh, w_dense, b_dense)
    assert out.shape == (1, OUTPUT_SIZE)
    assert jnp.allclose(out, ref, atol=1e-5, rtol=1e-5), "single-step mismatch"

    # 2) Same kernel exercising the in-kernel time loop + W_hh recurrence (T>1, B>1).
    T, B = 8, 8
    xs = jax.random.normal(ks, (T, B, INPUT_SIZE), jnp.float32)
    out_seq = jax.block_until_ready(
        lstm_forward(xs, *params, output_size=OUTPUT_SIZE))
    ref_seq = _ref_seq(xs, w_ih, b_ih, w_hh, b_hh, w_dense, b_dense)
    assert out_seq.shape == (T, B, OUTPUT_SIZE)
    assert jnp.allclose(out_seq, ref_seq, atol=1e-4, rtol=1e-4), "sequence mismatch"

    print("KERNEL_OK")
</pallas_src>

<mosaic_0001>
module attributes {stable_mosaic.version = 11 : i64} {
  func.func @_lstm_seq_kernel(%arg0: i32, %arg1: memref<1x1x32xf32, #tpu.memory_space<vmem>>, %arg2: memref<64x128xf32, #tpu.memory_space<vmem>>, %arg3: memref<1x128xf32, #tpu.memory_space<vmem>>, %arg4: memref<32x128xf32, #tpu.memory_space<vmem>>, %arg5: memref<1x128xf32, #tpu.memory_space<vmem>>, %arg6: memref<1x1x128xf32, #tpu.memory_space<vmem>>, %arg7: memref<1x32xf32, #tpu.memory_space<vmem>>, %arg8: memref<1x32xf32, #tpu.memory_space<vmem>>) attributes {dimension_semantics = [#tpu.dimension_semantics<arbitrary>], iteration_bounds = array<i64: 1>, scalar_prefetch = 0 : i64, scratch_operands = 2 : i64, tpu.core_type = #tpu.core_type<tc>, window_params = [{transform_indices = @transform_0, window_bounds = array<i64: 1, 1, 32>}, {pipeline_mode = #tpu.pipeline_mode<synchronous>, transform_indices = @transform_1, window_bounds = array<i64: 64, 128>}, {pipeline_mode = #tpu.pipeline_mode<synchronous>, transform_indices = @transform_2, window_bounds = array<i64: 1, 128>}, {pipeline_mode = #tpu.pipeline_mode<synchronous>, transform_indices = @transform_3, window_bounds = array<i64: 32, 128>}, {pipeline_mode = #tpu.pipeline_mode<synchronous>, transform_indices = @transform_4, window_bounds = array<i64: 1, 128>}, {transform_indices = @transform_5, window_bounds = array<i64: 1, 1, 128>}]} {
    %c0_i32 = arith.constant 0 : i32
    %0 = arith.cmpi eq, %arg0, %c0_i32 : i32
    %1 = arith.extui %0 : i1 to i32
    %c0_i32_0 = arith.constant 0 : i32
    %2 = arith.cmpi ne, %1, %c0_i32_0 : i32
    scf.if %2 {
      %cst_26 = arith.constant 0.000000e+00 : f32
      %46 = vector.broadcast %cst_26 : f32 to vector<1x32xf32>
      %c0_27 = arith.constant 0 : index
      %c0_28 = arith.constant 0 : index
      %47 = vector.load %arg7[%c0_27, %c0_28] : memref<1x32xf32, #tpu.memory_space<vmem>>, vector<1x32xf32>
      tpu.vector_store %arg7[%c0_27, %c0_28], %46 {strides = array<i32>} : memref<1x32xf32, #tpu.memory_space<vmem>>, vector<1x32xf32>,
      %cst_29 = arith.constant 0.000000e+00 : f32
      %48 = vector.broadcast %cst_29 : f32 to vector<1x32xf32>
      %c0_30 = arith.constant 0 : index
      %c0_31 = arith.constant 0 : index
      %49 = vector.load %arg8[%c0_30, %c0_31] : memref<1x32xf32, #tpu.memory_space<vmem>>, vector<1x32xf32>
      tpu.vector_store %arg8[%c0_30, %c0_31], %48 {strides = array<i32>} : memref<1x32xf32, #tpu.memory_space<vmem>>, vector<1x32xf32>,
    } else {
    }
    %c0 = arith.constant 0 : index
    %c0_1 = arith.constant 0 : index
    %c0_2 = arith.constant 0 : index
    %3 = vector.load %arg1[%c0, %c0_1, %c0_2] : memref<1x1x32xf32, #tpu.memory_space<vmem>>, vector<1x1x32xf32>
    %4 = vector.shape_cast %3 : vector<1x1x32xf32> to vector<1x32xf32>
    %c0_3 = arith.constant 0 : index
    %c0_4 = arith.constant 0 : index
    %5 = vector.load %arg7[%c0_3, %c0_4] : memref<1x32xf32, #tpu.memory_space<vmem>>, vector<1x32xf32>
    %6 = tpu.concatenate %4, %5 in 1 : vector<1x32xf32>, vector<1x32xf32> -> vector<1x64xf32>
    %c0_5 = arith.constant 0 : index
    %c0_6 = arith.constant 0 : index
    %7 = vector.load %arg2[%c0_5, %c0_6] : memref<64x128xf32, #tpu.memory_space<vmem>>, vector<64x128xf32>
    %cst = arith.constant dense<0.000000e+00> : vector<1x128xf32>
    %8 = tpu.matmul %6, %7, %cst {dimension_numbers = #tpu.dot_dimension_numbers<[1], [0], [0], [1], [0, 0, 1, 1], [], []>} : vector<1x64xf32>, vector<64x128xf32>, vector<1x128xf32> -> vector<1x128xf32>
    %c0_7 = arith.constant 0 : index
    %c0_8 = arith.constant 0 : index
    %9 = vector.load %arg3[%c0_7, %c0_8] : memref<1x128xf32, #tpu.memory_space<vmem>>, vector<1x128xf32>
    %10 = arith.addf %8, %9 : vector<1x128xf32>
    %11 = arith.negf %10 : vector<1x128xf32>
    %12 = math.exp %11 : vector<1x128xf32>
    %cst_9 = arith.constant 1.000000e+00 : f32
    %13 = vector.broadcast %cst_9 : f32 to vector<1x128xf32>
    %14 = arith.addf %13, %12 : vector<1x128xf32>
    %15 = arith.divf %13, %14 : vector<1x128xf32>
    %16 = math.tanh %10 : vector<1x128xf32>
    %17 = vector.extract_strided_slice %15 {offsets = [0, 0], sizes = [1, 32], strides = [1, 1]} : vector<1x128xf32> to vector<1x32xf32>
    %18 = vector.extract_strided_slice %15 {offsets = [0, 32], sizes = [1, 32], strides = [1, 1]} : vector<1x128xf32> to vector<1x32xf32>
    %19 = vector.extract_strided_slice %16 {offsets = [0, 64], sizes = [1, 32], strides = [1, 1]} : vector<1x128xf32> to vector<1x32xf32>
    %20 = vector.extract_strided_slice %15 {offsets = [0, 96], sizes = [1, 32], strides = [1, 1]} : vector<1x128xf32> to vector<1x32xf32>
    %c0_10 = arith.constant 0 : index
    %c0_11 = arith.constant 0 : index
    %21 = vector.load %arg8[%c0_10, %c0_11] : memref<1x32xf32, #tpu.memory_space<vmem>>, vector<1x32xf32>
    %22 = arith.mulf %18, %21 : vector<1x32xf32>
    %23 = arith.mulf %17, %19 : vector<1x32xf32>
    %24 = arith.addf %22, %23 : vector<1x32xf32>
    %25 = math.tanh %24 : vector<1x32xf32>
    %26 = arith.mulf %20, %25 : vector<1x32xf32>
    %c0_12 = arith.constant 0 : index
    %c0_13 = arith.constant 0 : index
    %27 = vector.load %arg8[%c0_12, %c0_13] : memref<1x32xf32, #tpu.memory_space<vmem>>, vector<1x32xf32>
    tpu.vector_store %arg8[%c0_12, %c0_13], %24 {strides = array<i32>} : memref<1x32xf32, #tpu.memory_space<vmem>>, vector<1x32xf32>,
    %c0_14 = arith.constant 0 : index
    %c0_15 = arith.constant 0 : index
    %28 = vector.load %arg7[%c0_14, %c0_15] : memref<1x32xf32, #tpu.memory_space<vmem>>, vector<1x32xf32>
    tpu.vector_store %arg7[%c0_14, %c0_15], %26 {strides = array<i32>} : memref<1x32xf32, #tpu.memory_space<vmem>>, vector<1x32xf32>,
    %c0_16 = arith.constant 0 : index
    %c0_17 = arith.constant 0 : index
    %29 = vector.load %arg4[%c0_16, %c0_17] : memref<32x128xf32, #tpu.memory_space<vmem>>, vector<32x128xf32>
    %cst_18 = arith.constant dense<0.000000e+00> : vector<1x128xf32>
    %30 = tpu.matmul %26, %29, %cst_18 {dimension_numbers = #tpu.dot_dimension_numbers<[1], [0], [0], [1], [0, 0, 1, 1], [], []>} : vector<1x32xf32>, vector<32x128xf32>, vector<1x128xf32> -> vector<1x128xf32>
    %c0_19 = arith.constant 0 : index
    %c0_20 = arith.constant 0 : index
    %31 = vector.load %arg5[%c0_19, %c0_20] : memref<1x128xf32, #tpu.memory_space<vmem>>, vector<1x128xf32>
    %32 = arith.addf %30, %31 : vector<1x128xf32>
    %cst_21 = arith.constant dense<0xFF800000> : vector<1xf32>
    %33 = vector.multi_reduction <maximumf>, %32, %cst_21 [1] : vector<1x128xf32> to vector<1xf32>
    %34 = vector.shape_cast %33 : vector<1xf32> to vector<1x1xf32>
    %35 = vector.broadcast %34 : vector<1x1xf32> to vector<1x128xf32>
    %36 = arith.subf %32, %35 : vector<1x128xf32>
    %37 = math.exp %36 : vector<1x128xf32>
    %cst_22 = arith.constant dense<0.000000e+00> : vector<1xf32>
    %38 = vector.multi_reduction <add>, %37, %cst_22 [1] : vector<1x128xf32> to vector<1xf32>
    %39 = vector.shape_cast %38 : vector<1xf32> to vector<1x1xf32>
    %40 = math.log %39 : vector<1x1xf32>
    %41 = vector.broadcast %40 : vector<1x1xf32> to vector<1x128xf32>
    %42 = arith.subf %36, %41 : vector<1x128xf32>
    %c0_23 = arith.constant 0 : index
    %c0_24 = arith.constant 0 : index
    %c0_25 = arith.constant 0 : index
    %43 = vector.load %arg6[%c0_23, %c0_24, %c0_25] : memref<1x1x128xf32, #tpu.memory_space<vmem>>, vector<1x1x128xf32>
    %44 = vector.shape_cast %43 : vector<1x1x128xf32> to vector<1x128xf32>
    %45 = vector.shape_cast %42 : vector<1x128xf32> to vector<1x1x128xf32>
    tpu.vector_store %arg6[%c0_23, %c0_24, %c0_25], %45 {strides = array<i32>} : memref<1x1x128xf32, #tpu.memory_space<vmem>>, vector<1x1x128xf32>,
    return
  }
  func.func @transform_0(%arg0: i32) -> (i32, i32, i32) {
    %c0_i32 = arith.constant 0 : i32
    %c0_i32_0 = arith.constant 0 : i32
    %c0_i32_1 = arith.constant 0 : i32
    return %arg0, %c0_i32, %c0_i32_0 : i32, i32, i32
  }
  func.func @transform_1(%arg0: i32) -> (i32, i32) {
    %c0_i32 = arith.constant 0 : i32
    %c0_i32_0 = arith.constant 0 : i32
    %c0_i32_1 = arith.constant 0 : i32
    return %c0_i32, %c0_i32_0 : i32, i32
  }
  func.func @transform_2(%arg0: i32) -> (i32, i32) {
    %c0_i32 = arith.constant 0 : i32
    %c0_i32_0 = arith.constant 0 : i32
    %c0_i32_1 = arith.constant 0 : i32
    return %c0_i32, %c0_i32_0 : i32, i32
  }
  func.func @transform_3(%arg0: i32) -> (i32, i32) {
    %c0_i32 = arith.constant 0 : i32
    %c0_i32_0 = arith.constant 0 : i32
    %c0_i32_1 = arith.constant 0 : i32
    return %c0_i32, %c0_i32_0 : i32, i32
  }
  func.func @transform_4(%arg0: i32) -> (i32, i32) {
    %c0_i32 = arith.constant 0 : i32
    %c0_i32_0 = arith.constant 0 : i32
    %c0_i32_1 = arith.constant 0 : i32
    return %c0_i32, %c0_i32_0 : i32, i32
  }
  func.func @transform_5(%arg0: i32) -> (i32, i32, i32) {
    %c0_i32 = arith.constant 0 : i32
    %c0_i32_0 = arith.constant 0 : i32
    %c0_i32_1 = arith.constant 0 : i32
    return %arg0, %c0_i32, %c0_i32_0 : i32, i32, i32
  }
}

</mosaic_0001>

<bundles_post_ra>
// kernel: lstm_forward.1
= control target key start
LH: loop header
LB: loop body
LE: loop exit
PB: predicated region body
PF: predicated region fallthrough
CT: control target
= control target key end

     0   :  { %10 = vsyncpa [#allocation5], 0  ;;  %s616_s0 = inlined_call_operand.hbm [shape: f32[1,1,32], index: 0, kind: input, shape index: {}]   ;;  %s617_s1 = inlined_call_operand.hbm [shape: f32[64,128], index: 1, kind: input, shape index: {}]   ;;  %s618_s2 = inlined_call_operand.vmem [shape: f32[1,128], index: 2, kind: input, shape index: {}]   ;;  %s619_s3 = inlined_call_operand.hbm [shape: f32[32,128], index: 3, kind: input, shape index: {}]   ;;  %s620_s4 = inlined_call_operand.vmem [shape: f32[1,128], index: 4, kind: input, shape index: {}]   ;;  %s621_s5 = inlined_call_operand.hbm [shape: f32[1,1,128], index: 5, kind: output, shape index: {}]  }
   0x1   :  { %11 = vsyncpa [#allocation8], 0 }
   0x2   :  { %12 = vsyncpa [#allocation6], 0  ;;  %s498_s18 = smov [#allocation7]   ;;  %s404_s22 = scalar_lea.hbm %s617_s1, 1024 }
   0x3   :  { %s28_s19 = sshll.u32 %s498_s18, 4  ;;  %p405_p0 = scmp.ne.s32.totalorder %s617_s1, %s404_s22  ;;  %s29_s19 = int_to_ptr.vmem [resolvable:$true] %s28_s19 }
   0x4   :  { %p408_p1 = scmp.lt.u32.totalorder %s404_s22, %s617_s1 }
   0x6   :  { %p410_p2 = pnand %p408_p1, %p405_p0 }
   0x8   :  { %413 = shalt.err (!%p410_p2)
}
   0x9   :  { %s414_s27 = scalar_lea.vmem %s29_s19, 1024  ;;  %p419_p4 = scmp.lt.s32.totalorder %s29_s19, %s29_s19 }
   0xa   :  { %p415_p3 = scmp.ne.s32.totalorder %s29_s19, %s414_s27  ;;  %p420_p5 = scmp.lt.s32.totalorder %s414_s27, %s414_s27 }
   0xc   :  { %p421_p6 = por %p420_p5, %p419_p4 }
   0xe   :  { %p422_p7 = pnand %p421_p6, %p415_p3 }
  0x10   :  { %425 = shalt.err (!%p422_p7)
}
  0x11   :  { %s499_s28 = smov 128   ;;  %s500_s29 = smov 8  }
  0x12   :  { %34 = dma.hbm_to_vmem [thread:$0]  %s617_s1, 1024, %s29_s19, [#allocation8], %s499_s28, %s499_s28, %s500_s29  }
  0x13   :  { %s501_s7 = smov [#allocation4]   ;;  %s502_s9 = smov [#allocation9]  }
  0x14   :  { %s19_s8 = sshll.u32 %s501_s7, 4  ;;  %s42_s10 = sshll.u32 %s502_s9, 4  ;;  %s20_s8 = int_to_ptr.vmem [resolvable:$true] %s19_s8  ;;  %s43_s10 = int_to_ptr.vmem [resolvable:$true] %s42_s10 }
  0x15   :  { %s426_s13 = scalar_lea.hbm %s616_s0, 16 }
  0x16   :  { %p427_p8 = scmp.ne.s32.totalorder %s616_s0, %s426_s13  ;;  %p430_p9 = scmp.lt.u32.totalorder %s426_s13, %s616_s0 }
  0x18   :  { %p432_p10 = pnand %p430_p9, %p427_p8 }
  0x1a   :  { %435 = shalt.err (!%p432_p10)
}
  0x1b   :  { %s436_s1 = scalar_lea.vmem %s20_s8, 16  ;;  %s440_s18 = scalar_lea.vmem %s20_s8, 32 }
  0x1c   :  { %p437_p11 = scmp.ne.s32.totalorder %s20_s8, %s436_s1  ;;  %p441_p12 = scmp.lt.s32.totalorder %s20_s8, %s20_s8 }
  0x1d   :  { %p442_p13 = scmp.lt.s32.totalorder %s440_s18, %s436_s1 }
  0x1f   :  { %p443_p0 = por %p442_p13, %p441_p12 }
  0x21   :  { %p444_p1 = pnand %p443_p0, %p437_p11 }
  0x23   :  { %447 = shalt.err (!%p444_p1)
}
  0x24   :  { %22 = dma.hbm_to_vmem [thread:$0]  %s616_s0, 16, %s20_s8, [#allocation5]  }
  0x25   :  { %s448_s23 = scalar_lea.hbm %s619_s3, 512 }
  0x26   :  { %p449_p2 = scmp.ne.s32.totalorder %s619_s3, %s448_s23  ;;  %p452_p3 = scmp.lt.u32.totalorder %s448_s23, %s619_s3 }
  0x28   :  { %p454_p4 = pnand %p452_p3, %p449_p2 }
  0x2a   :  { %457 = shalt.err (!%p454_p4)
}
  0x2b   :  { %s458_s30 = scalar_lea.vmem %s43_s10, 512  ;;  %p463_p6 = scmp.lt.s32.totalorder %s43_s10, %s43_s10 }
  0x2c   :  { %p459_p5 = scmp.ne.s32.totalorder %s43_s10, %s458_s30  ;;  %p464_p7 = scmp.lt.s32.totalorder %s458_s30, %s458_s30 }
  0x2e   :  { %p465_p8 = por %p464_p7, %p463_p6 }
  0x30   :  { %p466_p9 = pnand %p465_p8, %p459_p5 }
  0x32   :  { %469 = shalt.err (!%p466_p9)
}
  0x33   :  { %48 = dma.hbm_to_vmem [thread:$0]  %s619_s3, 512, %s43_s10, [#allocation8], %s499_s28, %s499_s28, %s500_s29  }
  0x34   :  { %492 = dma.done.wait [#allocation5], 16  }
  0x35   :  { %493 = vsyncadd [#allocation5], 4294967280 }
  0x36   :  { %494 = dma.done.wait [#allocation8], 1536  }
  0x37   :  { %495 = vsyncadd [#allocation8], 4294965760  ;;  %vm64_vm0 = vcmask 253952   ;;  %v503_v0 = vmov 0.0   ;;  %v504_v1 = vmov 0.0|0.0   ;;  %vm505_vm1 = vmmov 0  }
  0x38   :  { %65 = vst.msk [vmem:[#allocation2] sm:$0x1] %vm64_vm0, %v503_v0  ;;  %66 = vst.msk [vmem:[#allocation3] sm:$0x1] %vm64_vm0, %v503_v0  ;;  %362 = vmatprep.subr.bf16.mxu0 %v504_v1  ;;  %374 = vmatprep.subr.bf16.mxu1 %v504_v1  ;;  %v79_v2 = vld [vmem:[#allocation7] sm:$0xff]  ;;  %v80_v3 = vld [vmem:[#allocation7 + $0x8] sm:$0xff] }
  0x39   :  { %348 = vmatprep.mubr.msk.f32.mxu0 %vm505_vm1, %v503_v0  ;;  %359 = vmatprep.mubr.msk.f32.mxu1 %vm505_vm1, %v503_v0  ;;  %v81_v4 = vld [vmem:[#allocation7 + $0x10] sm:$0xff]  ;;  %v363_v6 = vpack.c.bf16 %v80_v3, %v79_v2  ;;  %v82_v7 = vld [vmem:[#allocation7 + $0x18] sm:$0xff]  ;;  %s506_s3 = smov 32   ;;  %v83_v10 = vld [vmem:[#allocation7 + $0x20] sm:$0xff]  ;;  %vm77_vm2 = vcmask 261120   ;;  %vm88_vm3 = vcmask 523264  }
  0x3a   :  { %v366_v8 = vpack.c.bf16 %v82_v7, %v81_v4  ;;  %v84_v11 = vld [vmem:[#allocation7 + $0x28] sm:$0xff]  ;;  %v85_v13 = vld [vmem:[#allocation7 + $0x30] sm:$0xff]  ;;  %v86_v14 = vld [vmem:[#allocation7 + $0x38] sm:$0xff]  ;;  %s507_s7 = smov 64   ;;  %vm283_vm4 = vcmask 1040384   ;;  %s508_s9 = smov 96  }
  0x3b   :  { %364 = vmatpush3.bf16.msra.mxu0 %v363_v6  ;;  %v369_v12 = vpack.c.bf16 %v84_v11, %v83_v10  ;;  %v372_v15 = vpack.c.bf16 %v86_v14, %v85_v13  ;;  %v67_v16 = vld [vmem:[#allocation4] sm:$0x1]  ;;  %v87_v19 = vld [vmem:[%s618_s2] sm:$0x1]  ;;  %v206_v34 = vld [vmem:[#allocation9] sm:$0xff] }
  0x3c   :  { %365 = vmatprep.subr.bf16.mxu0 %v504_v1  ;;  %v207_v35 = vld [vmem:[#allocation9 + $0x8] sm:$0xff]  ;;  %v208_v36 = vld [vmem:[#allocation9 + $0x10] sm:$0xff]  ;;  %v209_v38 = vld [vmem:[#allocation9 + $0x18] sm:$0xff] }
  0x3d   :  { %v375_v37 = vpack.c.bf16 %v207_v35, %v206_v34  ;;  %v378_v39 = vpack.c.bf16 %v209_v38, %v208_v36  ;;  %v210_v44 = vld [vmem:[%s620_s4] sm:$0x1]  ;;  %s509_s4 = smov [#allocation10]  }
  0x3e   :  { %s303_s10 = sshll.u32 %s509_s4, 4  ;;  %s304_s10 = int_to_ptr.vmem [resolvable:$true] %s303_s10 }
  0x3f   :  { %v313_v5 = vld [vmem:[#allocation2] ss:$0 sm:$0xff]  ;;  %v316_v9 = vld [vmem:[#allocation3] ss:$0 sm:$0xff]  ;;  %367 = vmatpush3.bf16.msra.mxu0 %v366_v8  ;;  %376 = vmatpush3.bf16.msra.mxu1 %v375_v37  ;;  %s470_s11 = scalar_lea.vmem %s304_s10, 16  ;;  %s474_s12 = scalar_lea.vmem %s304_s10, 32 }
  0x40   :  { %74 = vrot.lane.b32.xlu0 %v313_v5, %s506_s3  ;;  %175 = vrot.lane.b32.xlu1 %v316_v9, %s506_s3  ;;  %p471_p10 = scmp.ne.s32.totalorder %s304_s10, %s470_s11  ;;  %p475_p11 = scmp.lt.s32.totalorder %s304_s10, %s304_s10 }
  0x41   :  { %368 = vmatprep.subr.bf16.mxu0 %v504_v1  ;;  %377 = vmatprep.subr.bf16.mxu1 %v504_v1  ;;  %p476_p12 = scmp.lt.s32.totalorder %s474_s12, %s470_s11 }
  0x43   :  { %370 = vmatpush3.bf16.msra.mxu0 %v369_v12  ;;  %379 = vmatpush3.bf16.msra.mxu1 %v378_v39  ;;  %p477_p13 = por %p476_p12, %p475_p11 }
  0x44   :  { %371 = vmatprep.subr.bf16.mxu0 %v504_v1 }
  0x45   :  { %p478_p0 = pnand %p477_p13, %p471_p10 }
  0x47   :  { %373 = vmatpush3.bf16.msra.mxu0 %v372_v15 }
  0xb2   :  { %v75_v17 = vpop.permute.xlu0 %74  ;;  %v176_v30 = vpop.permute.xlu1 %175 }
  0xb3   :  { %v78_v18 = vsel %vm77_vm2, %v67_v16, %v75_v17 }
  0xb4   :  { %349 = vmatmul.mubr.msk.f32.vlgmr.msra.gmra.mrb[0].mxu0 %vm88_vm3, %v78_v18 }
 0x187   :  { %v158_v20 = vpop.f32.mrb[0].mxu0 }
 0x188   :  { %v159_v21 = vadd.f32 %v158_v20, %v87_v19  ;;  %v350_v22 = vpop.f32.mrb[1].mxu0 }
 0x18a   :  { %392 = vtanh.f32 %v159_v21  ;;  %v315_v24 = vmul.f32 -1.442695, %v159_v21 }
 0x18c   :  { %394 = vpow2.f32 %v315_v24 }
 0x194   :  { %v393_v23 = vpop.eup %392 }
 0x195   :  { %180 = vrot.lane.b32.xlu0 %v393_v23, %s507_s7 }
 0x196   :  { %v395_v25 = vpop.eup %394 }
 0x197   :  { %v165_v26 = vadd.f32 1.0, %v395_v25 }
 0x199   :  { %396 = vrcp.f32 %v165_v26 }
 0x1a3   :  { %v397_v27 = vpop.eup %396 }
 0x1a4   :  { %v178_v31 = vmul.f32 %v397_v27, %v176_v30 }
 0x207   :  { %v181_v28 = vpop.permute.xlu0 %180 }
 0x208   :  { %v183_v29 = vmul.f32 %v397_v27, %v181_v28 }
 0x20a   :  { %185 = vrot.lane.b32.xlu1 %v183_v29, %s506_s3 }
 0x27c   :  { %v186_v32 = vpop.permute.xlu1 %185 }
 0x27d   :  { %v188_v33 = vadd.f32 %v186_v32, %v178_v31 }
 0x27f   :  { %398 = vtanh.f32 %v188_v33 }
 0x289   :  { %v399_v40 = vpop.eup %398 }
 0x28a   :  { %191 = vrot.lane.b32.xlu0 %v399_v40, %s507_s7 }
 0x2fc   :  { %v192_v41 = vpop.permute.xlu0 %191 }
 0x2fd   :  { %v194_v42 = vmul.f32 %v397_v27, %v192_v41 }
 0x2ff   :  { %202 = vrot.lane.b32.xlu1 %v194_v42, %s506_s3 }
 0x371   :  { %v203_v43 = vpop.permute.xlu1 %202 }
 0x372   :  { %205 = vst.msk [vmem:[#allocation2] sm:$0x1] %vm64_vm0, %v203_v43  ;;  %360 = vmatmul.mubr.msk.f32.vlgmr.msra.gmra.mrb[0].mxu1 %vm77_vm2, %v203_v43 }
 0x445   :  { %v279_v45 = vpop.f32.mrb[0].mxu1 }
 0x446   :  { %v280_v46 = vadd.f32 %v279_v45, %v210_v44  ;;  %v361_v47 = vpop.f32.mrb[1].mxu1 }
 0x448   :  { %v284_v48 = vsel %vm283_vm4, %v280_v46, -inf }
 0x449   :  { %285 = vmax.xlane.f32.xlu0 %v284_v48 }
 0x45f   :  { %196 = vrot.lane.b32.xlu0 %v188_v33, %s508_s9 }
 0x4d6   :  { %v286_v49 = vpop.xlane.xlu0 %285 }
 0x4d7   :  { %v287_v50 = vsub.f32 %v280_v46, %v286_v49 }
 0x4d9   :  { %v288_v51 = vmul.f32 1.442695, %v287_v50 }
 0x4da   :  { %v197_v52 = vpop.permute.xlu0 %196 }
 0x4db   :  { %400 = vpow2.f32 %v288_v51  ;;  %200 = vst.msk [vmem:[#allocation3] sm:$0x1] %vm64_vm0, %v197_v52 }
 0x4e5   :  { %v401_v53 = vpop.eup %400 }
 0x4e6   :  { %v290_v54 = vsel %vm283_vm4, %v401_v53, 0.0 }
 0x4e7   :  { %291 = vadd.xlane.f32.xlu1 %v290_v54 }
 0x574   :  { %v292_v55 = vpop.xlane.xlu1 %291 }
 0x575   :  { %402 = vlog2.f32 %v292_v55 }
 0x57f   :  { %v403_v56 = vpop.eup %402 }
 0x580   :  { %v294_v57 = vmul.f32 0.6931472, %v403_v56 }
 0x582   :  { %v295_v58 = vsub.f32 %v287_v50, %v294_v57 }
 0x584   :  { %296 = vst [vmem:[#allocation10] sm:$0x1] %v295_v58 }
 0x585   :  { %481 = shalt.err (!%p478_p0)
}
 0x586   :  { %s482_s15 = scalar_lea.hbm %s621_s5, 16 }
 0x587   :  { %p483_p1 = scmp.ne.s32.totalorder %s621_s5, %s482_s15  ;;  %p486_p2 = scmp.lt.u32.totalorder %s482_s15, %s621_s5 }
 0x589   :  { %p488_p3 = pnand %p486_p2, %p483_p1 }
 0x58b   :  { %491 = shalt.err (!%p488_p3)
}
 0x58c   :  { %306 = dma.vmem_to_hbm [thread:$0]  %s304_s10, 16, %s621_s5, [#allocation6]  }
 0x58d   :  { %496 = dma.done.wait [#allocation6], 16  }
 0x58e   :  { %497 = vsyncadd [#allocation6], 4294967280 }
 0x58f   :  { %310 = vsyncpa [#allocation5], 1 }
 0x590   :  { %311 = vsyncpa [#allocation8], 1 }
 0x591   :  { %312 = vsyncpa [#allocation6], 1 }

</bundles_post_ra>
